<compile_context>
chip_gen: v5e
topology: v5e:2x2
jax: 0.10.0
libtpu: 0.0.40
codegen_flags: <defaults>
</compile_context>

<pallas_src>
import functools

import numpy as np
import jax
import jax.numpy as jnp
from jax.experimental import pallas as pl
from jax.experimental.pallas import tpu as pltpu

# ---------------- problem sizes (small, consistent with the module) ----------
B = 2            # batch
T = 8            # num_tokens (== context_length here)
D_IN = 32        # d_in
D_OUT = 32       # d_out
NUM_HEADS = 4
HEAD_DIM = D_OUT // NUM_HEADS

MASK_VALUE = -1e30   # large finite negative; exp(MASK_VALUE - m) underflows to 0


# ---------------------------- Pallas kernel ----------------------------------
def mha_kernel(x_ref, wqkv_ref, wo_ref, bo_ref, bias_ref, o_ref, *,
               num_heads, head_dim, d_out):
    x = x_ref[...]                                          # (B*T, d_in)

    # Fused QKV projection (1/sqrt(head_dim) already folded into the Q columns).
    qkv = jnp.dot(x, wqkv_ref[...], preferred_element_type=jnp.float32)  # (B*T, 3*d_out)
    q = qkv[:, 0 * d_out:1 * d_out]                         # (B*T, d_out)
    k = qkv[:, 1 * d_out:2 * d_out]
    v = qkv[:, 2 * d_out:3 * d_out]

    rows = q.shape[0]                                       # B*T (static)
    bias = bias_ref[...]                                    # (B*T, B*T) block-causal additive mask

    # Lane index over the d_out axis; used to select one head's lanes (no division).
    lane = jax.lax.broadcasted_iota(jnp.int32, (rows, d_out), 1)

    ctx = jnp.zeros((rows, d_out), jnp.float32)
    for h in range(num_heads):                              # unrolled; no slices / concats per head
        lo = h * head_dim
        sel = (lane >= lo) & (lane < lo + head_dim)         # head-h lane selector
        qh = jnp.where(sel, q, 0.0)                         # other heads' lanes -> 0

        # Scores over the merged B*T sequence; zeroed lanes kill cross-head terms,
        # the additive bias kills cross-batch and future positions.
        s = jnp.einsum('td,sd->ts', qh, k,
                       preferred_element_type=jnp.float32)  # (B*T, B*T)
        s = s + bias

        # Numerically-stable softmax with an exact divide.
        m = jnp.max(s, axis=-1, keepdims=True)
        p = jnp.exp(s - m)
        a = p / jnp.sum(p, axis=-1, keepdims=True)
        # dropout(p=0.0) is identity in inference mode
        # TODO(synk): training-mode dropout on attention weights is not implemented.

        # Head-h context lands in head-h lanes, all other lanes stay 0, so the
        # per-head sum reproduces the concat-over-heads layout.
        ctx = ctx + jnp.dot(a, jnp.where(sel, v, 0.0),
                            preferred_element_type=jnp.float32)

    # Output projection with bias.
    out = jnp.dot(ctx, wo_ref[...], preferred_element_type=jnp.float32) + bo_ref[...]
    o_ref[...] = out.astype(o_ref.dtype)                    # (B*T, d_out) — no in-kernel reshape


# --------------------------- parameter prep (init-time) -----------------------
def prepare_mha_params(wq_t, wk_t, wv_t, head_dim):
    """One-time prep, OUT of the per-call path: fuse QKV weights and fold in the
    1/sqrt(head_dim) softmax scale (applied to the Q columns only)."""
    scale = 1.0 / (float(head_dim) ** 0.5)
    return jnp.concatenate([wq_t * scale, wk_t, wv_t], axis=1)   # (d_in, 3*d_out)


# ------------------------------ wrapper ---------------------------------------
@jax.jit
def mha_forward(x, wqkv, wo_t, bo):
    """x: (B, T, d_in); wqkv: prefused+scaled (d_in, 3*d_out); wo_t: (d_out, d_out); bo: (1, d_out)."""
    b, t, d_in = x.shape
    d_out = wo_t.shape[0]

    # Block-diagonal causal mask over the merged B*T sequence (the analogue of
    # the module's registered `mask` buffer).  Built with numpy at trace time,
    # so under jit it is a baked constant — zero per-call cost.
    r = np.arange(b * t)
    keep = (r[:, None] // t == r[None, :] // t) & (r[None, :] <= r[:, None])
    bias = jnp.asarray(np.where(keep, 0.0, MASK_VALUE), dtype=jnp.float32)

    x2 = x.reshape(b * t, d_in)          # contiguous flatten: free layout plumbing

    kernel = functools.partial(mha_kernel, num_heads=NUM_HEADS,
                               head_dim=HEAD_DIM, d_out=d_out)

    out = pl.pallas_call(
        kernel,
        out_shape=jax.ShapeDtypeStruct((b * t, d_out), x.dtype),
        # Single ungridded invocation, whole (tiny) arrays resident in VMEM.
        in_specs=[
            pl.BlockSpec(memory_space=pltpu.MemorySpace.VMEM),  # x2
            pl.BlockSpec(memory_space=pltpu.MemorySpace.VMEM),  # wqkv
            pl.BlockSpec(memory_space=pltpu.MemorySpace.VMEM),  # wo
            pl.BlockSpec(memory_space=pltpu.MemorySpace.VMEM),  # bo
            pl.BlockSpec(memory_space=pltpu.MemorySpace.VMEM),  # bias mask
        ],
        out_specs=pl.BlockSpec(memory_space=pltpu.MemorySpace.VMEM),
    )(x2, wqkv, wo_t, bo, bias)

    return out.reshape(b, t, d_out)      # contiguous un-flatten in the wrapper (free)


# --------------------------- pure-JAX reference --------------------------------
def mha_reference(x, wq_t, wk_t, wv_t, wo_t, bo):
    b, t, _ = x.shape
    hp = jax.lax.Precision.HIGHEST
    def proj(w):
        y = jnp.einsum('bti,io->bto', x, w, precision=hp)
        return y.reshape(b, t, NUM_HEADS, HEAD_DIM).transpose(0, 2, 1, 3)
    q, k, v = proj(wq_t), proj(wk_t), proj(wv_t)
    scores = jnp.einsum('bhtd,bhsd->bhts', q, k, precision=hp)
    mask = np.triu(np.ones((t, t), dtype=bool), k=1)
    scores = jnp.where(mask[None, None], -jnp.inf, scores)
    attn = jax.nn.softmax(scores / float(np.sqrt(HEAD_DIM)), axis=-1)
    ctx = jnp.einsum('bhts,bhsd->bhtd', attn, v, precision=hp)
    ctx = ctx.transpose(0, 2, 1, 3).reshape(b, t, D_OUT)
    return jnp.einsum('btd,do->bto', ctx, wo_t, precision=hp) + bo[0]


# ------------------------------- main -------------------------------------------
if __name__ == "__main__":
    key = jax.random.PRNGKey(0)
    kx, kq, kk, kv, ko, kb = jax.random.split(key, 6)

    x = jax.random.normal(kx, (B, T, D_IN), dtype=jnp.float32)

    # Deterministic "nn.Linear"-style params (uniform in +-1/sqrt(fan_in)),
    # stored as (in_features, out_features), i.e. already W.T relative to PyTorch.
    bound_in = 1.0 / float(np.sqrt(D_IN))
    bound_out = 1.0 / float(np.sqrt(D_OUT))
    wq_t = jax.random.uniform(kq, (D_IN, D_OUT), jnp.float32, -bound_in, bound_in)
    wk_t = jax.random.uniform(kk, (D_IN, D_OUT), jnp.float32, -bound_in, bound_in)
    wv_t = jax.random.uniform(kv, (D_IN, D_OUT), jnp.float32, -bound_in, bound_in)
    wo_t = jax.random.uniform(ko, (D_OUT, D_OUT), jnp.float32, -bound_out, bound_out)
    bo = jax.random.uniform(kb, (1, D_OUT), jnp.float32, -bound_out, bound_out)

    # One-time parameter prep (init-time), hoisted out of the per-call path.
    wqkv = prepare_mha_params(wq_t, wk_t, wv_t, HEAD_DIM)

    out = mha_forward(x, wqkv, wo_t, bo)
    out = jax.block_until_ready(out)

    ref = mha_reference(x, wq_t, wk_t, wv_t, wo_t, bo)
    assert out.shape == (B, T, D_OUT)
    # Tolerance tightened vs previous version (exact softmax divide, f32 matmuls).
    assert jnp.allclose(out, ref, atol=2e-3, rtol=2e-3), "mismatch vs reference"

    print("KERNEL_OK")
</pallas_src>

<mosaic_0001>
module attributes {stable_mosaic.version = 11 : i64} {
  func.func @mha_kernel(%arg0: memref<16x32xf32, #tpu.memory_space<vmem>>, %arg1: memref<32x96xf32, #tpu.memory_space<vmem>>, %arg2: memref<32x32xf32, #tpu.memory_space<vmem>>, %arg3: memref<1x32xf32, #tpu.memory_space<vmem>>, %arg4: memref<16x16xf32, #tpu.memory_space<vmem>>, %arg5: memref<16x32xf32, #tpu.memory_space<vmem>>) attributes {dimension_semantics = [], scalar_prefetch = 0 : i64, scratch_operands = 0 : i64, tpu.core_type = #tpu.core_type<tc>} {
    %c0 = arith.constant 0 : index
    %c0_0 = arith.constant 0 : index
    %0 = vector.load %arg0[%c0, %c0_0] : memref<16x32xf32, #tpu.memory_space<vmem>>, vector<16x32xf32>
    %c0_1 = arith.constant 0 : index
    %c0_2 = arith.constant 0 : index
    %1 = vector.load %arg1[%c0_1, %c0_2] : memref<32x96xf32, #tpu.memory_space<vmem>>, vector<32x96xf32>
    %cst = arith.constant dense<0.000000e+00> : vector<16x96xf32>
    %2 = tpu.matmul %0, %1, %cst {dimension_numbers = #tpu.dot_dimension_numbers<[1], [0], [0], [1], [0, 0, 1, 1], [], []>} : vector<16x32xf32>, vector<32x96xf32>, vector<16x96xf32> -> vector<16x96xf32>
    %3 = vector.extract_strided_slice %2 {offsets = [0, 0], sizes = [16, 32], strides = [1, 1]} : vector<16x96xf32> to vector<16x32xf32>
    %4 = vector.extract_strided_slice %2 {offsets = [0, 32], sizes = [16, 32], strides = [1, 1]} : vector<16x96xf32> to vector<16x32xf32>
    %5 = vector.extract_strided_slice %2 {offsets = [0, 64], sizes = [16, 32], strides = [1, 1]} : vector<16x96xf32> to vector<16x32xf32>
    %c0_3 = arith.constant 0 : index
    %c0_4 = arith.constant 0 : index
    %6 = vector.load %arg4[%c0_3, %c0_4] : memref<16x16xf32, #tpu.memory_space<vmem>>, vector<16x16xf32>
    %7 = tpu.iota {dimensions = array<i32: 1>} : vector<16x32xi32>
    %cst_5 = arith.constant 0.000000e+00 : f32
    %8 = vector.broadcast %cst_5 : f32 to vector<16x32xf32>
    %c0_i32 = arith.constant 0 : i32
    %9 = vector.broadcast %c0_i32 : i32 to vector<16x32xi32>
    %10 = arith.cmpi sge, %7, %9 : vector<16x32xi32>
    %c8_i32 = arith.constant 8 : i32
    %11 = vector.broadcast %c8_i32 : i32 to vector<16x32xi32>
    %12 = arith.cmpi slt, %7, %11 : vector<16x32xi32>
    %13 = arith.andi %10, %12 : vector<16x32xi1>
    %cst_6 = arith.constant 0.000000e+00 : f32
    %14 = vector.broadcast %cst_6 : f32 to vector<16x32xf32>
    %15 = arith.select %13, %3, %14 : vector<16x32xi1>, vector<16x32xf32>
    "tpu.trace_start"() <{level = 10 : i32, message = "td,sd->ts"}> : () -> ()
    %cst_7 = arith.constant dense<0.000000e+00> : vector<16x16xf32>
    %16 = tpu.matmul %15, %4, %cst_7 {dimension_numbers = #tpu.dot_dimension_numbers<[1], [1], [0], [0], [0, 0, 1, 0], [], []>} : vector<16x32xf32>, vector<16x32xf32>, vector<16x16xf32> -> vector<16x16xf32>
    "tpu.trace_stop"() : () -> ()
    %17 = arith.addf %16, %6 : vector<16x16xf32>
    %cst_8 = arith.constant dense<0xFF800000> : vector<16xf32>
    %18 = vector.multi_reduction <maximumf>, %17, %cst_8 [1] : vector<16x16xf32> to vector<16xf32>
    %19 = vector.shape_cast %18 : vector<16xf32> to vector<16x1xf32>
    %20 = vector.broadcast %19 : vector<16x1xf32> to vector<16x16xf32>
    %21 = arith.subf %17, %20 : vector<16x16xf32>
    %22 = math.exp %21 : vector<16x16xf32>
    %cst_9 = arith.constant dense<0.000000e+00> : vector<16xf32>
    %23 = vector.multi_reduction <add>, %22, %cst_9 [1] : vector<16x16xf32> to vector<16xf32>
    %24 = vector.shape_cast %23 : vector<16xf32> to vector<16x1xf32>
    %25 = vector.broadcast %24 : vector<16x1xf32> to vector<16x16xf32>
    %26 = arith.divf %22, %25 : vector<16x16xf32>
    %cst_10 = arith.constant 0.000000e+00 : f32
    %27 = vector.broadcast %cst_10 : f32 to vector<16x32xf32>
    %28 = arith.select %13, %5, %27 : vector<16x32xi1>, vector<16x32xf32>
    %cst_11 = arith.constant dense<0.000000e+00> : vector<16x32xf32>
    %29 = tpu.matmul %26, %28, %cst_11 {dimension_numbers = #tpu.dot_dimension_numbers<[1], [0], [0], [1], [0, 0, 1, 1], [], []>} : vector<16x16xf32>, vector<16x32xf32>, vector<16x32xf32> -> vector<16x32xf32>
    %30 = arith.addf %8, %29 : vector<16x32xf32>
    %c8_i32_12 = arith.constant 8 : i32
    %31 = vector.broadcast %c8_i32_12 : i32 to vector<16x32xi32>
    %32 = arith.cmpi sge, %7, %31 : vector<16x32xi32>
    %c16_i32 = arith.constant 16 : i32
    %33 = vector.broadcast %c16_i32 : i32 to vector<16x32xi32>
    %34 = arith.cmpi slt, %7, %33 : vector<16x32xi32>
    %35 = arith.andi %32, %34 : vector<16x32xi1>
    %cst_13 = arith.constant 0.000000e+00 : f32
    %36 = vector.broadcast %cst_13 : f32 to vector<16x32xf32>
    %37 = arith.select %35, %3, %36 : vector<16x32xi1>, vector<16x32xf32>
    "tpu.trace_start"() <{level = 10 : i32, message = "td,sd->ts"}> : () -> ()
    %cst_14 = arith.constant dense<0.000000e+00> : vector<16x16xf32>
    %38 = tpu.matmul %37, %4, %cst_14 {dimension_numbers = #tpu.dot_dimension_numbers<[1], [1], [0], [0], [0, 0, 1, 0], [], []>} : vector<16x32xf32>, vector<16x32xf32>, vector<16x16xf32> -> vector<16x16xf32>
    "tpu.trace_stop"() : () -> ()
    %39 = arith.addf %38, %6 : vector<16x16xf32>
    %cst_15 = arith.constant dense<0xFF800000> : vector<16xf32>
    %40 = vector.multi_reduction <maximumf>, %39, %cst_15 [1] : vector<16x16xf32> to vector<16xf32>
    %41 = vector.shape_cast %40 : vector<16xf32> to vector<16x1xf32>
    %42 = vector.broadcast %41 : vector<16x1xf32> to vector<16x16xf32>
    %43 = arith.subf %39, %42 : vector<16x16xf32>
    %44 = math.exp %43 : vector<16x16xf32>
    %cst_16 = arith.constant dense<0.000000e+00> : vector<16xf32>
    %45 = vector.multi_reduction <add>, %44, %cst_16 [1] : vector<16x16xf32> to vector<16xf32>
    %46 = vector.shape_cast %45 : vector<16xf32> to vector<16x1xf32>
    %47 = vector.broadcast %46 : vector<16x1xf32> to vector<16x16xf32>
    %48 = arith.divf %44, %47 : vector<16x16xf32>
    %cst_17 = arith.constant 0.000000e+00 : f32
    %49 = vector.broadcast %cst_17 : f32 to vector<16x32xf32>
    %50 = arith.select %35, %5, %49 : vector<16x32xi1>, vector<16x32xf32>
    %cst_18 = arith.constant dense<0.000000e+00> : vector<16x32xf32>
    %51 = tpu.matmul %48, %50, %cst_18 {dimension_numbers = #tpu.dot_dimension_numbers<[1], [0], [0], [1], [0, 0, 1, 1], [], []>} : vector<16x16xf32>, vector<16x32xf32>, vector<16x32xf32> -> vector<16x32xf32>
    %52 = arith.addf %30, %51 : vector<16x32xf32>
    %c16_i32_19 = arith.constant 16 : i32
    %53 = vector.broadcast %c16_i32_19 : i32 to vector<16x32xi32>
    %54 = arith.cmpi sge, %7, %53 : vector<16x32xi32>
    %c24_i32 = arith.constant 24 : i32
    %55 = vector.broadcast %c24_i32 : i32 to vector<16x32xi32>
    %56 = arith.cmpi slt, %7, %55 : vector<16x32xi32>
    %57 = arith.andi %54, %56 : vector<16x32xi1>
    %cst_20 = arith.constant 0.000000e+00 : f32
    %58 = vector.broadcast %cst_20 : f32 to vector<16x32xf32>
    %59 = arith.select %57, %3, %58 : vector<16x32xi1>, vector<16x32xf32>
    "tpu.trace_start"() <{level = 10 : i32, message = "td,sd->ts"}> : () -> ()
    %cst_21 = arith.constant dense<0.000000e+00> : vector<16x16xf32>
    %60 = tpu.matmul %59, %4, %cst_21 {dimension_numbers = #tpu.dot_dimension_numbers<[1], [1], [0], [0], [0, 0, 1, 0], [], []>} : vector<16x32xf32>, vector<16x32xf32>, vector<16x16xf32> -> vector<16x16xf32>
    "tpu.trace_stop"() : () -> ()
    %61 = arith.addf %60, %6 : vector<16x16xf32>
    %cst_22 = arith.constant dense<0xFF800000> : vector<16xf32>
    %62 = vector.multi_reduction <maximumf>, %61, %cst_22 [1] : vector<16x16xf32> to vector<16xf32>
    %63 = vector.shape_cast %62 : vector<16xf32> to vector<16x1xf32>
    %64 = vector.broadcast %63 : vector<16x1xf32> to vector<16x16xf32>
    %65 = arith.subf %61, %64 : vector<16x16xf32>
    %66 = math.exp %65 : vector<16x16xf32>
    %cst_23 = arith.constant dense<0.000000e+00> : vector<16xf32>
    %67 = vector.multi_reduction <add>, %66, %cst_23 [1] : vector<16x16xf32> to vector<16xf32>
    %68 = vector.shape_cast %67 : vector<16xf32> to vector<16x1xf32>
    %69 = vector.broadcast %68 : vector<16x1xf32> to vector<16x16xf32>
    %70 = arith.divf %66, %69 : vector<16x16xf32>
    %cst_24 = arith.constant 0.000000e+00 : f32
    %71 = vector.broadcast %cst_24 : f32 to vector<16x32xf32>
    %72 = arith.select %57, %5, %71 : vector<16x32xi1>, vector<16x32xf32>
    %cst_25 = arith.constant dense<0.000000e+00> : vector<16x32xf32>
    %73 = tpu.matmul %70, %72, %cst_25 {dimension_numbers = #tpu.dot_dimension_numbers<[1], [0], [0], [1], [0, 0, 1, 1], [], []>} : vector<16x16xf32>, vector<16x32xf32>, vector<16x32xf32> -> vector<16x32xf32>
    %74 = arith.addf %52, %73 : vector<16x32xf32>
    %c24_i32_26 = arith.constant 24 : i32
    %75 = vector.broadcast %c24_i32_26 : i32 to vector<16x32xi32>
    %76 = arith.cmpi sge, %7, %75 : vector<16x32xi32>
    %c32_i32 = arith.constant 32 : i32
    %77 = vector.broadcast %c32_i32 : i32 to vector<16x32xi32>
    %78 = arith.cmpi slt, %7, %77 : vector<16x32xi32>
    %79 = arith.andi %76, %78 : vector<16x32xi1>
    %cst_27 = arith.constant 0.000000e+00 : f32
    %80 = vector.broadcast %cst_27 : f32 to vector<16x32xf32>
    %81 = arith.select %79, %3, %80 : vector<16x32xi1>, vector<16x32xf32>
    "tpu.trace_start"() <{level = 10 : i32, message = "td,sd->ts"}> : () -> ()
    %cst_28 = arith.constant dense<0.000000e+00> : vector<16x16xf32>
    %82 = tpu.matmul %81, %4, %cst_28 {dimension_numbers = #tpu.dot_dimension_numbers<[1], [1], [0], [0], [0, 0, 1, 0], [], []>} : vector<16x32xf32>, vector<16x32xf32>, vector<16x16xf32> -> vector<16x16xf32>
    "tpu.trace_stop"() : () -> ()
    %83 = arith.addf %82, %6 : vector<16x16xf32>
    %cst_29 = arith.constant dense<0xFF800000> : vector<16xf32>
    %84 = vector.multi_reduction <maximumf>, %83, %cst_29 [1] : vector<16x16xf32> to vector<16xf32>
    %85 = vector.shape_cast %84 : vector<16xf32> to vector<16x1xf32>
    %86 = vector.broadcast %85 : vector<16x1xf32> to vector<16x16xf32>
    %87 = arith.subf %83, %86 : vector<16x16xf32>
    %88 = math.exp %87 : vector<16x16xf32>
    %cst_30 = arith.constant dense<0.000000e+00> : vector<16xf32>
    %89 = vector.multi_reduction <add>, %88, %cst_30 [1] : vector<16x16xf32> to vector<16xf32>
    %90 = vector.shape_cast %89 : vector<16xf32> to vector<16x1xf32>
    %91 = vector.broadcast %90 : vector<16x1xf32> to vector<16x16xf32>
    %92 = arith.divf %88, %91 : vector<16x16xf32>
    %cst_31 = arith.constant 0.000000e+00 : f32
    %93 = vector.broadcast %cst_31 : f32 to vector<16x32xf32>
    %94 = arith.select %79, %5, %93 : vector<16x32xi1>, vector<16x32xf32>
    %cst_32 = arith.constant dense<0.000000e+00> : vector<16x32xf32>
    %95 = tpu.matmul %92, %94, %cst_32 {dimension_numbers = #tpu.dot_dimension_numbers<[1], [0], [0], [1], [0, 0, 1, 1], [], []>} : vector<16x16xf32>, vector<16x32xf32>, vector<16x32xf32> -> vector<16x32xf32>
    %96 = arith.addf %74, %95 : vector<16x32xf32>
    %c0_33 = arith.constant 0 : index
    %c0_34 = arith.constant 0 : index
    %97 = vector.load %arg2[%c0_33, %c0_34] : memref<32x32xf32, #tpu.memory_space<vmem>>, vector<32x32xf32>
    %cst_35 = arith.constant dense<0.000000e+00> : vector<16x32xf32>
    %98 = tpu.matmul %96, %97, %cst_35 {dimension_numbers = #tpu.dot_dimension_numbers<[1], [0], [0], [1], [0, 0, 1, 1], [], []>} : vector<16x32xf32>, vector<32x32xf32>, vector<16x32xf32> -> vector<16x32xf32>
    %c0_36 = arith.constant 0 : index
    %c0_37 = arith.constant 0 : index
    %99 = vector.load %arg3[%c0_36, %c0_37] : memref<1x32xf32, #tpu.memory_space<vmem>>, vector<1x32xf32>
    %100 = vector.broadcast %99 : vector<1x32xf32> to vector<16x32xf32>
    %101 = arith.addf %98, %100 : vector<16x32xf32>
    %c0_38 = arith.constant 0 : index
    %c0_39 = arith.constant 0 : index
    %102 = vector.load %arg5[%c0_38, %c0_39] : memref<16x32xf32, #tpu.memory_space<vmem>>, vector<16x32xf32>
    tpu.vector_store %arg5[%c0_38, %c0_39], %101 {strides = array<i32>} : memref<16x32xf32, #tpu.memory_space<vmem>>, vector<16x32xf32>,
    return
  }
}

</mosaic_0001>

<bundles_post_ra>
// kernel: mha_forward.1
= control target key start
LH: loop header
LB: loop body
LE: loop exit
PB: predicated region body
PF: predicated region fallthrough
CT: control target
= control target key end

     0   :  { %10 = vsyncpa [#allocation3], 0  ;;  %s1120_s0 = inlined_call_operand.hbm [shape: f32[16,32], index: 0, kind: input, shape index: {}]   ;;  %s1121_s1 = inlined_call_operand.hbm [shape: f32[32,96], index: 1, kind: input, shape index: {}]   ;;  %s1122_s2 = inlined_call_operand.hbm [shape: f32[32,32], index: 2, kind: input, shape index: {}]   ;;  %s1123_s3 = inlined_call_operand.vmem [shape: f32[1,32], index: 3, kind: input, shape index: {}]   ;;  %s1124_s4 = inlined_call_operand.hbm [shape: f32[16,16], index: 4, kind: input, shape index: {}]   ;;  %s1125_s5 = inlined_call_operand.hbm [shape: f32[16,32], index: 5, kind: output, shape index: {}]  }
   0x1   :  { %11 = vsyncpa [#allocation6], 0 }
   0x2   :  { %12 = vsyncpa [#allocation9], 0 }
   0x3   :  { %13 = vsyncpa [#allocation4], 0  ;;  %s31_s20 = sshll.u32 %s1121_s1, 4  ;;  %s869_s21 = smov [#allocation5]   ;;  %s32_s20 = int_to_ptr.hbm [resolvable:$true] %s31_s20 }
   0x4   :  { %s33_s22 = sshll.u32 %s869_s21, 4  ;;  %s18_s25 = sshll.u32 %s1120_s0, 4  ;;  %s34_s22 = int_to_ptr.vmem [resolvable:$true] %s33_s22  ;;  %s19_s25 = int_to_ptr.hbm [resolvable:$true] %s18_s25 }
   0x5   :  { %s870_s26 = smov 128   ;;  %s871_s27 = smov 8  }
   0x6   :  { %39 = dma.hbm_to_vmem [thread:$0]  %s32_s20, 512, %s34_s22, [#allocation6], %s870_s26, %s870_s26, %s871_s27  }
   0x7   :  { %s872_s28 = smov [#allocation2]   ;;  %s44_s1 = sshll.u32 %s1122_s2, 4  ;;  %s45_s1 = int_to_ptr.hbm [resolvable:$true] %s44_s1 }
   0x8   :  { %s20_s29 = sshll.u32 %s872_s28, 4  ;;  %s59_s8 = sshll.u32 %s1124_s4, 4  ;;  %s21_s29 = int_to_ptr.vmem [resolvable:$true] %s20_s29  ;;  %s60_s8 = int_to_ptr.hbm [resolvable:$true] %s59_s8 }
   0x9   :  { %26 = dma.hbm_to_vmem [thread:$0]  %s19_s25, 256, %s21_s29, [#allocation3], %s870_s26, %s870_s26, %s871_s27  }
   0xa   :  { %s873_s9 = smov [#allocation7]   ;;  %s874_s11 = smov [#allocation8]  }
   0xb   :  { %s46_s10 = sshll.u32 %s873_s9, 4  ;;  %s61_s2 = sshll.u32 %s874_s11, 4  ;;  %s47_s10 = int_to_ptr.vmem [resolvable:$true] %s46_s10  ;;  %s62_s2 = int_to_ptr.vmem [resolvable:$true] %s61_s2 }
   0xc   :  { %52 = dma.hbm_to_vmem [thread:$0]  %s45_s1, 512, %s47_s10, [#allocation6], %s870_s26, %s870_s26, %s871_s27  }
   0xd   :  { %67 = dma.hbm_to_vmem [thread:$0]  %s60_s8, 256, %s62_s2, [#allocation9], %s870_s26, %s870_s26, %s871_s27  }
   0xe   :  { %861 = dma.done.wait [#allocation3], 256  }
   0xf   :  { %862 = vsyncadd [#allocation3], 4294967040 }
  0x10   :  { %863 = dma.done.wait [#allocation6], 1024  }
  0x11   :  { %864 = vsyncadd [#allocation6], 4294966272 }
  0x12   :  { %865 = dma.done.wait [#allocation9], 256  }
  0x13   :  { %866 = vsyncadd [#allocation9], 4294967040  ;;  %v89_v0 = vld [vmem:[#allocation5 + $0x18] sm:$0xff]  ;;  %v88_v1 = vld [vmem:[#allocation5 + $0x10] sm:$0xff]  ;;  %vm90_vm0 = vcmask 261120   ;;  %s875_s4 = smov 64   ;;  %v122_v8 = vlaneseq }
  0x14   :  { %693 = vmatpush.msra.mxu1 %v89_v0  ;;  %109 = vmatpush.msra.mxu0 %v89_v0  ;;  %v87_v2 = vld [vmem:[#allocation5 + $0x8] sm:$0xff]  ;;  %v86_v3 = vld [vmem:[#allocation5] sm:$0xff]  ;;  %v85_v4 = vld [vmem:[#allocation2 + $0x8] sm:$0xff]  ;;  %s876_s12 = smov 96   ;;  %vm168_vm8 = vcmask 130048   ;;  %s877_s15 = smov [#allocation10]  }
  0x15   :  { %v84_v5 = vld [vmem:[#allocation2] sm:$0xff]  ;;  %v942_v9 = vand.u32 127, %v122_v8  ;;  %v1017_v23 = vld [vmem:[#allocation8] sm:$0xff]  ;;  %v1019_v25 = vld [vmem:[#allocation8 + $0x8] sm:$0xff]  ;;  %s640_s16 = sshll.u32 %s877_s15, 4  ;;  %s642_s19 = sshll.u32 %s1125_s5, 4  ;;  %s641_s16 = int_to_ptr.vmem [resolvable:$true] %s640_s16  ;;  %s643_s19 = int_to_ptr.hbm [resolvable:$true] %s642_s19 }
  0x16   :  { %694 = vmatpush.msra.mxu1 %v88_v1  ;;  %110 = vmatpush.msra.mxu0 %v88_v1 }
  0x17   :  { %vm225_vm1 = vcmp.ge.s32.totalorder %v942_v9, 8  ;;  %vm226_vm2 = vcmp.lt.s32.totalorder %v942_v9, 16  ;;  %vm125_vm4 = vcmp.lt.s32.totalorder %v942_v9, 8  ;;  %vm367_vm5 = vcmp.ge.s32.totalorder %v942_v9, 16 }
  0x18   :  { %695 = vmatpush.msra.mxu1 %v87_v2  ;;  %111 = vmatpush.msra.mxu0 %v87_v2  ;;  %vm948_vm3 = vmand %vm225_vm1, %vm226_vm2  ;;  %vm368_vm6 = vcmp.lt.s32.totalorder %v942_v9, 24  ;;  %vm482_vm13 = vcmp.ge.s32.totalorder %v942_v9, 24  ;;  %vm483_vm14 = vcmp.lt.s32.totalorder %v942_v9, 32 }
  0x19   :  { %vm978_vm7 = vmand %vm367_vm5, %vm368_vm6 }
  0x1a   :  { %696 = vmatpush.msra.mxu1 %v86_v3  ;;  %112 = vmatpush.msra.mxu0 %v86_v3  ;;  %vm1046_vm15 = vmand %vm482_vm13, %vm483_vm14 }
  0x1b   :  { %658 = vmatmul.msk.f32.vlgmr.msra.gmra.mxu1 %vm90_vm0, %v85_v4  ;;  %657 = vmatmul.msk.f32.vlgmr.msra.gmra.mxu0 %vm90_vm0, %v84_v5 }
  0x98   :  { %v934_v6 = vpop.f32.mrf.mxu1  ;;  %v938_v7 = vpop.f32.mrf.mxu0 }
  0x99   :  { %219 = vrot.lane.b32.xlu2 %v934_v6, %s875_s4  ;;  %133 = vrot.lane.b32.xlu0 %v934_v6, %s876_s12  ;;  %v127_v16 = vsel %vm125_vm4, %v938_v7, 0.0  ;;  %v228_v17 = vsel %vm948_vm3, %v938_v7, 0.0  ;;  %v370_v18 = vsel %vm978_vm7, %v938_v7, 0.0  ;;  %v128_v19 = vsel %vm125_vm4, %v934_v6, 0.0 }
  0x9a   :  { %v229_v20 = vsel %vm948_vm3, %v934_v6, 0.0  ;;  %v371_v21 = vsel %vm978_vm7, %v934_v6, 0.0  ;;  %v485_v11 = vsel %vm1046_vm15, %v938_v7, 0.0 }
  0xa1   :  { %217 = vrot.lane.b32.xlu2 %v938_v7, %s875_s4  ;;  %131 = vrot.lane.b32.xlu0 %v938_v7, %s876_s12 }
  0xf3   :  { %v946_v10 = vpop.permute.xlu2 %219 }
  0xf4   :  { %697 = vmatpush.msk.msra.mxu3 %vm948_vm3, %v946_v10 }
  0xfb   :  { %v955_v12 = vpop.permute.xlu2 %217 }
  0xfc   :  { %698 = vmatpush.msk.msra.mxu3 %vm948_vm3, %v955_v12 }
  0xfe   :  { %671 = vmatpush.msk.msrb.mxu3 %vm125_vm4, %v946_v10 }
 0x100   :  { %672 = vmatpush.msk.msrb.mxu3 %vm125_vm4, %v955_v12 }
 0x10b   :  { %v134_v13 = vpop.permute.xlu0 %133 }
 0x10c   :  { %659 = vmatpush.xpose.msk.msrb.mxu1 %vm90_vm0, %v134_v13  ;;  %663 = vmatpush.xpose.msk.msra.mxu2 %vm90_vm0, %v134_v13 }
 0x10d   :  { %675 = vmatpush.xpose.msk.msrb.mxu0 %vm90_vm0, %v134_v13 }
 0x113   :  { %v132_v14 = vpop.permute.xlu0 %131 }
 0x114   :  { %660 = vmatpush.xpose.msk.msrb.mxu1 %vm90_vm0, %v132_v14  ;;  %664 = vmatpush.xpose.msk.msra.mxu2 %vm90_vm0, %v132_v14 }
 0x115   :  { %676 = vmatpush.xpose.msk.msrb.mxu0 %vm90_vm0, %v132_v14 }
 0x117   :  { %661 = vmatmul.msk.f32.vlgmr.msrb.gmra.mxu1 %vm90_vm0, %v127_v16  ;;  %665 = vmatmul.msk.f32.vlgmr.msra.gmra.mxu2 %vm90_vm0, %v228_v17 }
 0x118   :  { %667 = vmatpush.msk.msrb.mxu2 %vm948_vm3, %v946_v10  ;;  %679 = vmatpush.msk.msra.mxu1 %vm978_vm7, %v946_v10 }
 0x119   :  { %677 = vmatmul.msk.f32.vlgmr.msrb.gmra.mxu0 %vm90_vm0, %v370_v18 }
 0x11a   :  { %668 = vmatpush.msk.msrb.mxu2 %vm948_vm3, %v955_v12  ;;  %680 = vmatpush.msk.msra.mxu1 %vm978_vm7, %v955_v12 }
 0x11c   :  { %683 = vmatpush.xpose.msk.msra.mxu2 %vm90_vm0, %v134_v13 }
 0x11f   :  { %662 = vmatmul.msk.f32.gmra.mxu1 %vm90_vm0, %v128_v19  ;;  %666 = vmatmul.msk.f32.gmra.mxu2 %vm90_vm0, %v229_v20 }
 0x120   :  { %684 = vmatpush.xpose.msk.msra.mxu2 %vm90_vm0, %v132_v14  ;;  %v486_v14 = vsel %vm1046_vm15, %v934_v6, 0.0 }
 0x121   :  { %678 = vmatmul.msk.f32.gmra.mxu0 %vm90_vm0, %v371_v21 }
 0x194   :  { %v162_v22 = vpop.f32.mrf.mxu1 }
 0x195   :  { %v163_v44 = vadd.f32 %v162_v22, %v1017_v23 }
 0x196   :  { %v395_v46 = vpop.f32.mrf.mxu0 }
 0x197   :  { %v169_v45 = vsel %vm168_vm8, %v163_v44, -inf  ;;  %v396_v47 = vadd.f32 %v395_v46, %v1017_v23 }
 0x199   :  { %v401_v48 = vsel %vm168_vm8, %v396_v47, -inf }
 0x19a   :  { %v253_v24 = vpop.f32.mrf.mxu2 }
 0x19b   :  { %v254_v26 = vadd.f32 %v253_v24, %v1017_v23 }
 0x19c   :  { %v165_v27 = vpop.f32.mrf.mxu1 }
 0x19d   :  { %v166_v28 = vadd.f32 %v165_v27, %v1019_v25  ;;  %v259_v29 = vsel %vm168_vm8, %v254_v26, -inf }
 0x19e   :  { %260 = vmax.xlane.f32.xlu1 %v259_v29 }
 0x19f   :  { %v172_v30 = vsel %vm168_vm8, %v166_v28, -inf }
 0x1a0   :  { %173 = vmax.xlane.f32.xlu2 %v172_v30 }
 0x1a2   :  { %v256_v31 = vpop.f32.mrf.mxu2 }
 0x1a3   :  { %v1026_v32 = vadd.f32 %v256_v31, %v1019_v25 }
 0x1a5   :  { %v262_v33 = vsel %vm168_vm8, %v1026_v32, -inf }
 0x1a6   :  { %263 = vmax.xlane.f32.xlu0 %v262_v33 }
 0x211   :  { %v261_v34 = vpop.xlane.xlu1 %260 }
 0x212   :  { %v265_v35 = vsub.f32 %v254_v26, %v261_v34 }
 0x213   :  { %v174_v36 = vpop.xlane.xlu2 %173 }
 0x214   :  { %v267_v37 = vmul.f32 1.442695, %v265_v35  ;;  %v176_v38 = vsub.f32 %v166_v28, %v174_v36 }
 0x216   :  { %709 = vpow2.f32 %v267_v37  ;;  %v179_v39 = vmul.f32 1.442695, %v176_v38  ;;  %v398_v37 = vpop.f32.mrf.mxu0 }
 0x218   :  { %711 = vpow2.f32 %v179_v39 }
 0x219   :  { %v264_v31 = vpop.xlane.xlu0 %263 }
 0x21a   :  { %v266_v35 = vsub.f32 %v1026_v32, %v264_v31 }
 0x21c   :  { %v710_v40 = vpop.eup %709  ;;  %v269_v38 = vmul.f32 1.442695, %v266_v35 }
 0x21d   :  { %v271_v41 = vsel %vm168_vm8, %v710_v40, 0.0 }
 0x21e   :  { %v1031_v42 = vpop.eup %711  ;;  %272 = vadd.xlane.f32.xlu1 %v271_v41 }
 0x21f   :  { %v184_v43 = vsel %vm168_vm8, %v1031_v42, 0.0 }
 0x220   :  { %185 = vadd.xlane.f32.xlu0 %v184_v43 }
 0x226   :  { %170 = vmax.xlane.f32.xlu1 %v169_v45 }
 0x22e   :  { %402 = vmax.xlane.f32.xlu1 %v401_v48 }
 0x291   :  { %v273_v49 = vpop.xlane.xlu1 %272 }
 0x292   :  { %713 = vrcp.f32 %v273_v49  ;;  %v288_v55 = vand.u32 2147483648, %v273_v49  ;;  %v286_v58 = vand.u32 2147483647, %v273_v49  ;;  %vm282_vm10 = vweird.f32 %v273_v49 }
 0x294   :  { %v289_v60 = vor.u32 1.1754944e-38, %v288_v55  ;;  %vm287_vm12 = vcmp.eq.f32.partialorder %v286_v58, 8.507059e+37 }
 0x298   :  { %v714_v50 = vpop.eup %713 }
 0x299   :  { %v278_v51 = vmul.f32 %v714_v50, %v273_v49  ;;  %v171_v52 = vpop.xlane.xlu1 %170  ;;  %vm283_vm9 = vweird.f32 %v714_v50 }
 0x29a   :  { %v175_v53 = vsub.f32 %v163_v44, %v171_v52  ;;  %vm284_vm11 = vmor %vm282_vm10, %vm283_vm9 }
 0x29b   :  { %v279_v54 = vsub.f32 1.0, %v278_v51 }
 0x29c   :  { %v177_v56 = vmul.f32 1.442695, %v175_v53 }
 0x29d   :  { %v280_v57 = vmul.f32 %v714_v50, %v279_v54  ;;  %v186_v54 = vpop.xlane.xlu0 %185 }
 0x29e   :  { %715 = vpow2.f32 %v177_v56 }
 0x29f   :  { %v281_v59 = vadd.f32 %v714_v50, %v280_v57 }
 0x2a1   :  { %v403_v61 = vpop.xlane.xlu1 %402  ;;  %v285_v62 = vsel %vm284_vm11, %v714_v50, %v281_v59 }
 0x2a2   :  { %v407_v63 = vsub.f32 %v396_v47, %v403_v61  ;;  %v290_v0 = vsel %vm287_vm12, %v289_v60, %v285_v62 }
 0x2a3   :  { %v291_v1 = vmul.f32 %v710_v40, %v290_v0 }
 0x2a4   :  { %v1039_v2 = vpop.eup %715  ;;  %v409_v3 = vmul.f32 1.442695, %v407_v63 }
 0x2a5   :  { %669 = vmatmul.msk.f32.vlgmr.msrb.gmra.mxu2 %vm168_vm8, %v291_v1  ;;  %v181_v4 = vsel %vm168_vm8, %v1039_v2, 0.0 }
 0x2a6   :  { %717 = vpow2.f32 %v409_v3  ;;  %182 = vadd.xlane.f32.xlu2 %v181_v4 }
 0x2ac   :  { %v718_v8 = vpop.eup %717 }
 0x2ad   :  { %685 = vmatmul.msk.f32.vlgmr.msra.gmra.mxu2 %vm90_vm0, %v485_v11  ;;  %v413_v13 = vsel %vm168_vm8, %v718_v8, 0.0 }
 0x2ae   :  { %414 = vadd.xlane.f32.xlu2 %v413_v13 }
 0x2b5   :  { %686 = vmatmul.msk.f32.gmra.mxu2 %vm90_vm0, %v486_v14 }
 0x319   :  { %v1059_v9 = vpop.xlane.xlu2 %182 }
 0x31a   :  { %vm192_vm11 = vweird.f32 %v1059_v9 }
 0x321   :  { %v415_v15 = vpop.xlane.xlu2 %414 }
 0x322   :  { %719 = vrcp.f32 %v415_v15  ;;  %v430_v19 = vand.u32 2147483648, %v415_v15  ;;  %v428_v21 = vand.u32 2147483647, %v415_v15  ;;  %vm424_vm2 = vweird.f32 %v415_v15 }
 0x323   :  { %721 = vpow2.f32 %v269_v38 }
 0x324   :  { %v431_v24 = vor.u32 1.1754944e-38, %v430_v19  ;;  %vm429_vm4 = vcmp.eq.f32.partialorder %v428_v21, 8.507059e+37 }
 0x328   :  { %v720_v16 = vpop.eup %719  ;;  %v1061_v17 = vpop.f32.mrf.mxu2 }
 0x329   :  { %v420_v18 = vmul.f32 %v720_v16, %v415_v15  ;;  %vm425_vm1 = vweird.f32 %v720_v16  ;;  %v722_v40 = vpop.eup %721 }
 0x32a   :  { %vm426_vm3 = vmor %vm424_vm2, %vm425_vm1  ;;  %v274_v41 = vsel %vm168_vm8, %v722_v40, 0.0  ;;  %vm207_vm1 = vweird.f32 %v186_v54 }
 0x32b   :  { %v421_v7 = vsub.f32 1.0, %v420_v18 }
 0x32d   :  { %v422_v20 = vmul.f32 %v720_v16, %v421_v7  ;;  %v198_v7 = vand.u32 2147483648, %v1059_v9 }
 0x32f   :  { %v423_v22 = vadd.f32 %v720_v16, %v422_v20  ;;  %v196_v20 = vand.u32 2147483647, %v1059_v9 }
 0x330   :  { %v510_v6 = vpop.f32.mrf.mxu2 }
 0x331   :  { %v427_v26 = vsel %vm426_vm3, %v720_v16, %v423_v22  ;;  %v511_v27 = vadd.f32 %v510_v6, %v1017_v23  ;;  %v399_v23 = vadd.f32 %v398_v37, %v1019_v25  ;;  %v199_v6 = vor.u32 1.1754944e-38, %v198_v7 }
 0x332   :  { %v432_v28 = vsel %vm429_vm4, %v431_v24, %v427_v26  ;;  %vm197_vm13 = vcmp.eq.f32.partialorder %v196_v20, 8.507059e+37 }
 0x333   :  { %v433_v29 = vmul.f32 %v718_v8, %v432_v28  ;;  %v516_v30 = vsel %vm168_vm8, %v511_v27, -inf  ;;  %v404_v39 = vsel %vm168_vm8, %v399_v23, -inf }
 0x334   :  { %517 = vmax.xlane.f32.xlu1 %v516_v30 }
 0x335   :  { %681 = vmatmul.msk.f32.vlgmr.msra.gmra.mxu1 %vm168_vm8, %v433_v29  ;;  %v211_v29 = vand.u32 2147483647, %v186_v54 }
 0x337   :  { %vm212_vm3 = vcmp.eq.f32.partialorder %v211_v29, 8.507059e+37 }
 0x338   :  { %v513_v33 = vpop.f32.mrf.mxu2 }
 0x339   :  { %v514_v34 = vadd.f32 %v513_v33, %v1019_v25 }
 0x33b   :  { %v519_v36 = vsel %vm168_vm8, %v514_v34, -inf }
 0x33c   :  { %520 = vmax.xlane.f32.xlu1 %v519_v36 }
 0x344   :  { %405 = vmax.xlane.f32.xlu1 %v404_v39 }
 0x34c   :  { %275 = vadd.xlane.f32.xlu1 %v274_v41 }
 0x3a7   :  { %v518_v43 = vpop.xlane.xlu1 %517 }
 0x3a8   :  { %v522_v44 = vsub.f32 %v511_v27, %v518_v43 }
 0x3aa   :  { %v524_v45 = vmul.f32 1.442695, %v522_v44 }
 0x3ac   :  { %723 = vpow2.f32 %v524_v45 }
 0x3af   :  { %v521_v32 = vpop.xlane.xlu1 %520 }
 0x3b0   :  { %v523_v46 = vsub.f32 %v514_v34, %v521_v32 }
 0x3b2   :  { %v1072_v47 = vpop.eup %723  ;;  %v526_v48 = vmul.f32 1.442695, %v523_v46 }
 0x3b3   :  { %v528_v25 = vsel %vm168_vm8, %v1072_v47, 0.0 }
 0x3b4   :  { %725 = vpow2.f32 %v526_v48  ;;  %529 = vadd.xlane.f32.xlu1 %v528_v25 }
 0x3b5   :  { %727 = vrcp.f32 %v1059_v9 }
 0x3b7   :  { %v406_v49 = vpop.xlane.xlu1 %405 }
 0x3b8   :  { %v408_v50 = vsub.f32 %v399_v23, %v406_v49 }
 0x3ba   :  { %v1076_v51 = vpop.eup %725  ;;  %v411_v52 = vmul.f32 1.442695, %v408_v50 }
 0x3bb   :  { %v531_v53 = vsel %vm168_vm8, %v1076_v51, 0.0  ;;  %v728_v56 = vpop.eup %727 }
 0x3bc   :  { %729 = vpow2.f32 %v411_v52  ;;  %532 = vadd.xlane.f32.xlu0 %v531_v53  ;;  %v188_v58 = vmul.f32 %v728_v56, %v1059_v9  ;;  %vm193_vm9 = vweird.f32 %v728_v56  ;;  %v213_v9 = vand.u32 2147483648, %v186_v54 }
 0x3bd   :  { %vm194_vm12 = vmor %vm192_vm11, %vm193_vm9 }
 0x3be   :  { %v189_v62 = vsub.f32 1.0, %v188_v58  ;;  %v214_v31 = vor.u32 1.1754944e-38, %v213_v9 }
 0x3bf   :  { %v276_v55 = vpop.xlane.xlu1 %275 }
 0x3c0   :  { %731 = vrcp.f32 %v276_v55  ;;  %v303_v3 = vand.u32 2147483648, %v276_v55  ;;  %v190_v4 = vmul.f32 %v728_v56, %v189_v62  ;;  %v301_v11 = vand.u32 2147483647, %v276_v55 }
 0x3c1   :  { %733 = vrcp.f32 %v186_v54  ;;  %vm297_vm6 = vweird.f32 %v276_v55 }
 0x3c2   :  { %v1081_v57 = vpop.eup %729  ;;  %v304_v15 = vor.u32 1.1754944e-38, %v303_v3  ;;  %v191_v16 = vadd.f32 %v728_v56, %v190_v4  ;;  %vm302_vm10 = vcmp.eq.f32.partialorder %v301_v11, 8.507059e+37 }
 0x3c3   :  { %v416_v59 = vsel %vm168_vm8, %v1081_v57, 0.0 }
 0x3c4   :  { %417 = vadd.xlane.f32.xlu1 %v416_v59  ;;  %v195_v24 = vsel %vm194_vm12, %v728_v56, %v191_v16  ;;  %v474_v16 = vpop.f32.mrf.mxu1 }
 0x3c5   :  { %v200_v26 = vsel %vm197_vm13, %v199_v6, %v195_v24  ;;  %v708_v6 = vld [vmem:[%s1123_s3] ss:$0 sm:$0xff] }
 0x3c6   :  { %v732_v60 = vpop.eup %731  ;;  %v201_v28 = vmul.f32 %v1039_v2, %v200_v26 }
 0x3c7   :  { %v734_v61 = vpop.eup %733  ;;  %v293_v63 = vmul.f32 %v732_v60, %v276_v55  ;;  %vm298_vm5 = vweird.f32 %v732_v60 }
 0x3c8   :  { %v203_v1 = vmul.f32 %v734_v61, %v186_v54  ;;  %vm299_vm7 = vmor %vm297_vm6, %vm298_vm5  ;;  %vm208_vm14 = vweird.f32 %v734_v61 }
 0x3c9   :  { %v294_v0 = vsub.f32 1.0, %v293_v63  ;;  %vm209_vm2 = vmor %vm207_vm1, %vm208_vm14 }
 0x3ca   :  { %v204_v14 = vsub.f32 1.0, %v203_v1  ;;  %v599_v1 = vld [vmem:[#allocation7 + $0x10] sm:$0xff] }
 0x3cb   :  { %v295_v8 = vmul.f32 %v732_v60, %v294_v0  ;;  %v600_v0 = vld [vmem:[#allocation7 + $0x18] sm:$0xff] }
 0x3cc   :  { %v205_v22 = vmul.f32 %v734_v61, %v204_v14  ;;  %623 = vmatpush.msra.mxu0 %v600_v0 }
 0x3cd   :  { %v296_v13 = vadd.f32 %v732_v60, %v295_v8  ;;  %v598_v8 = vld [vmem:[#allocation7 + $0x8] sm:$0xff] }
 0x3ce   :  { %v206_v27 = vadd.f32 %v734_v61, %v205_v22  ;;  %624 = vmatpush.msra.mxu0 %v599_v1 }
 0x3cf   :  { %v300_v18 = vsel %vm299_vm7, %v732_v60, %v296_v13 }
 0x3d0   :  { %v305_v19 = vsel %vm302_vm10, %v304_v15, %v300_v18  ;;  %v210_v30 = vsel %vm209_vm2, %v734_v61, %v206_v27  ;;  %625 = vmatpush.msra.mxu0 %v598_v8 }
 0x3d1   :  { %v306_v21 = vmul.f32 %v722_v40, %v305_v19 }
 0x3d3   :  { %670 = vmatmul.msk.f32.vlgmr.msra.gmra.mxu3 %vm168_vm8, %v306_v21 }
 0x3d4   :  { %687 = vmatpush.msk.msra.mxu3 %vm1046_vm15, %v946_v10  ;;  %v215_v10 = vsel %vm212_vm3, %v214_v31, %v210_v30 }
 0x3d5   :  { %v216_v33 = vmul.f32 %v1031_v42, %v215_v10 }
 0x3d6   :  { %688 = vmatpush.msk.msra.mxu3 %vm1046_vm15, %v955_v12 }
 0x3db   :  { %673 = vmatmul.msk.f32.vlgmr.msrb.gmra.mxu3 %vm168_vm8, %v201_v28 }
 0x3e3   :  { %674 = vmatmul.msk.f32.gmra.mxu3 %vm168_vm8, %v216_v33 }
 0x427   :  { %v530_v12 = vpop.xlane.xlu1 %529 }
 0x428   :  { %735 = vrcp.f32 %v530_v12  ;;  %v545_v2 = vand.u32 2147483648, %v530_v12  ;;  %v543_v38 = vand.u32 2147483647, %v530_v12  ;;  %vm539_vm4 = vweird.f32 %v530_v12 }
 0x42a   :  { %v546_v40 = vor.u32 1.1754944e-38, %v545_v2  ;;  %vm544_vm6 = vcmp.eq.f32.partialorder %v543_v38, 8.507059e+37 }
 0x42e   :  { %v736_v5 = vpop.eup %735 }
 0x42f   :  { %v535_v34 = vmul.f32 %v736_v5, %v530_v12  ;;  %v533_v35 = vpop.xlane.xlu0 %532  ;;  %vm540_vm15 = vweird.f32 %v736_v5 }
 0x430   :  { %737 = vrcp.f32 %v533_v35  ;;  %vm541_vm5 = vmor %vm539_vm4, %vm540_vm15  ;;  %v560_v46 = vand.u32 2147483648, %v533_v35  ;;  %v558_v25 = vand.u32 2147483647, %v533_v35  ;;  %vm554_vm9 = vweird.f32 %v533_v35 }
 0x431   :  { %v536_v36 = vsub.f32 1.0, %v535_v34 }
 0x432   :  { %v561_v52 = vor.u32 1.1754944e-38, %v560_v46  ;;  %vm559_vm11 = vcmp.eq.f32.partialorder %v558_v25, 8.507059e+37 }
 0x433   :  { %v537_v37 = vmul.f32 %v736_v5, %v536_v36 }
 0x435   :  { %v538_v23 = vadd.f32 %v736_v5, %v537_v37 }
 0x436   :  { %v738_v39 = vpop.eup %737 }
 0x437   :  { %v542_v41 = vsel %vm541_vm5, %v736_v5, %v538_v23  ;;  %v550_v42 = vmul.f32 %v738_v39, %v533_v35  ;;  %v418_v43 = vpop.xlane.xlu1 %417  ;;  %vm555_vm7 = vweird.f32 %v738_v39 }
 0x438   :  { %v547_v44 = vsel %vm544_vm6, %v546_v40, %v542_v41  ;;  %739 = vrcp.f32 %v418_v43  ;;  %vm556_vm10 = vmor %vm554_vm9, %vm555_vm7  ;;  %v445_v59 = vand.u32 2147483648, %v418_v43  ;;  %v443_v60 = vand.u32 2147483647, %v418_v43 }
 0x439   :  { %v551_v45 = vsub.f32 1.0, %v550_v42  ;;  %v548_v32 = vmul.f32 %v1072_v47, %v547_v44  ;;  %vm439_vm13 = vweird.f32 %v418_v43 }
 0x43a   :  { %v446_v62 = vor.u32 1.1754944e-38, %v445_v59  ;;  %vm444_vm1 = vcmp.eq.f32.partialorder %v443_v60, 8.507059e+37 }
 0x43b   :  { %v552_v48 = vmul.f32 %v738_v39, %v551_v45  ;;  %689 = vmatmul.msk.f32.vlgmr.msra.gmra.mxu3 %vm168_vm8, %v548_v32 }
 0x43d   :  { %v553_v49 = vadd.f32 %v738_v39, %v552_v48 }
 0x43e   :  { %v740_v50 = vpop.eup %739 }
 0x43f   :  { %v435_v53 = vmul.f32 %v740_v50, %v418_v43  ;;  %v557_v54 = vsel %vm556_vm10, %v738_v39, %v553_v49  ;;  %vm440_vm12 = vweird.f32 %v740_v50 }
 0x440   :  { %v562_v55 = vsel %vm559_vm11, %v561_v52, %v557_v54  ;;  %vm441_vm14 = vmor %vm439_vm13, %vm440_vm12 }
 0x441   :  { %v436_v56 = vsub.f32 1.0, %v435_v53  ;;  %v563_v58 = vmul.f32 %v1076_v51, %v562_v55  ;;  %v597_v51 = vld [vmem:[#allocation7] sm:$0xff] }
 0x442   :  { %626 = vmatpush.msra.mxu0 %v597_v51 }
 0x443   :  { %v437_v47 = vmul.f32 %v740_v50, %v436_v56  ;;  %690 = vmatmul.msk.f32.gmra.mxu3 %vm168_vm8, %v563_v58 }
 0x445   :  { %v438_v61 = vadd.f32 %v740_v50, %v437_v47 }
 0x447   :  { %v442_v63 = vsel %vm441_vm14, %v740_v50, %v438_v61 }
 0x448   :  { %v447_v3 = vsel %vm444_vm1, %v446_v62, %v442_v63 }
 0x449   :  { %v448_v4 = vmul.f32 %v1081_v57, %v447_v3 }
 0x44b   :  { %682 = vmatmul.msk.f32.gmra.mxu1 %vm168_vm8, %v448_v4 }
 0x456   :  { %v335_v11 = vpop.f32.mrf.mxu3 }
 0x45e   :  { %v361_v13 = vpop.f32.mrf.mxu3 }
 0x45f   :  { %v362_v15 = vadd.f32 %v361_v13, %v1061_v17 }
 0x461   :  { %v480_v18 = vadd.f32 %v474_v16, %v362_v15 }
 0x466   :  { %v364_v14 = vpop.f32.mrf.mxu3 }
 0x467   :  { %v365_v20 = vadd.f32 %v364_v14, %v335_v11 }
 0x4be   :  { %v589_v7 = vpop.f32.mrf.mxu3 }
 0x4bf   :  { %v595_v19 = vadd.f32 %v589_v7, %v480_v18 }
 0x4c1   :  { %691 = vmatmul.msk.f32.vlgmr.msra.gmra.mxu0 %vm90_vm0, %v595_v19 }
 0x4c6   :  { %v592_v22 = vpop.f32.mrf.mxu3 }
 0x4c8   :  { %v477_v57 = vpop.f32.mrf.mxu1 }
 0x4c9   :  { %v481_v21 = vadd.f32 %v477_v57, %v365_v20 }
 0x4cb   :  { %v596_v24 = vadd.f32 %v592_v22, %v481_v21 }
 0x4cd   :  { %692 = vmatmul.msk.f32.gmra.mxu0 %vm90_vm0, %v596_v24 }
 0x53e   :  { %v628_v26 = vpop.f32.mrf.mxu0 }
 0x53f   :  { %v629_v27 = vadd.f32 %v708_v6, %v628_v26 }
 0x541   :  { %634 = vst.msk [vmem:[#allocation10] sm:$0xff] %vm90_vm0, %v629_v27 }
 0x54a   :  { %v631_v17 = vpop.f32.mrf.mxu0 }
 0x54b   :  { %v632_v9 = vadd.f32 %v708_v6, %v631_v17 }
 0x54d   :  { %635 = vst.msk [vmem:[#allocation10 + $0x8] sm:$0xff] %vm90_vm0, %v632_v9 }
 0x54e   :  { %648 = dma.vmem_to_hbm [thread:$0]  %s641_s16, 256, %s643_s19, [#allocation4], %s870_s26, %s870_s26, %s871_s27  }
 0x54f   :  { %867 = dma.done.wait [#allocation4], 256  }
 0x550   :  { %868 = vsyncadd [#allocation4], 4294967040 }
 0x551   :  { %653 = vsyncpa [#allocation3], 1 }
 0x552   :  { %654 = vsyncpa [#allocation6], 1 }
 0x553   :  { %655 = vsyncpa [#allocation9], 1 }
 0x554   :  { %656 = vsyncpa [#allocation4], 1 }

</bundles_post_ra>
